<compile_context>
chip_gen: v5e
topology: v5e:2x2
jax: 0.10.0
libtpu: 0.0.40
codegen_flags: <defaults>
</compile_context>

<pallas_src>
import functools

import jax
import jax.numpy as jnp
from jax.experimental import pallas as pl
from jax.experimental.pallas import tpu as pltpu


def _tlam_kernel(x_ref, y_ref, w1t_ref, b1_ref, w2t_ref, b2_ref, o_ref):
    x = x_ref[...].astype(jnp.float32)          # (C, T)
    y = y_ref[...].astype(jnp.float32)          # (C, T)

    # 1x1 conv #1 (+ folded BN1) + ReLU  -> (Ci, T)   [MXU + VPU]
    h = jnp.dot(w1t_ref[...], y, preferred_element_type=jnp.float32) + b1_ref[...]
    h = jnp.maximum(h, 0.0)

    # 1x1 conv #2 (+ folded BN2) + Sigmoid -> (C, T)  [MXU + EUP]
    a = jnp.dot(w2t_ref[...], h, preferred_element_type=jnp.float32) + b2_ref[...]
    ly = jax.nn.sigmoid(a)

    # local attention fusion: L(y) * x + y
    o_ref[...] = (ly * x + y).astype(o_ref.dtype)


def _pick_spatial_tile(C, HW, itemsize, t_cap, vmem_budget=24 * 1024 * 1024):
    """Largest lane-dense (multiple-of-128) spatial tile that fits the VMEM
    budget: 3 (C, T) tiles (x, y, out), each double-buffered by the pipeline."""
    if HW % 128 != 0:
        return HW                      # full-extent block (always legal)
    max_t = vmem_budget // (6 * C * itemsize)
    t = min(HW, t_cap, max_t)
    return max(128, (t // 128) * 128)


@functools.partial(jax.jit, static_argnames=("t_hw",))
def tlam_forward(x_nchw, y_nchw, w1t, b1, w2t, b2, *, t_hw=32768):
    """x, y: (N, C, H, W).
    w1t: (Ci, C), b1: (Ci, 1), w2t: (C, Ci), b2: (C, 1)  (BN already folded).
    """
    N, C, H, W = x_nchw.shape
    Ci = w1t.shape[0]
    HW = H * W

    # Free reshape (channels-first view): (N, C, H, W) -> (N*C, H*W).
    x2d = x_nchw.reshape(N * C, HW)
    y2d = y_nchw.reshape(N * C, HW)

    t = _pick_spatial_tile(C, HW, x_nchw.dtype.itemsize, t_hw)
    grid = (N, pl.cdiv(HW, t))

    out2d = pl.pallas_call(
        _tlam_kernel,
        out_shape=jax.ShapeDtypeStruct((N * C, HW), x_nchw.dtype),
        grid_spec=pltpu.PrefetchScalarGridSpec(
            num_scalar_prefetch=0,
            grid=grid,
            in_specs=[
                pl.BlockSpec((C, t), lambda n, i: (n, i)),     # x tile (C, T)
                pl.BlockSpec((C, t), lambda n, i: (n, i)),     # y tile (C, T)
                pl.BlockSpec((Ci, C), lambda n, i: (0, 0)),    # W1^T (grid-const)
                pl.BlockSpec((Ci, 1), lambda n, i: (0, 0)),    # b1   (Ci, 1)
                pl.BlockSpec((C, Ci), lambda n, i: (0, 0)),    # W2^T (grid-const)
                pl.BlockSpec((C, 1), lambda n, i: (0, 0)),     # b2   (C, 1)
            ],
            out_specs=pl.BlockSpec((C, t), lambda n, i: (n, i)),
        ),
        compiler_params=pltpu.CompilerParams(
            dimension_semantics=("parallel", "parallel"),
            vmem_limit_bytes=64 * 1024 * 1024),
    )(x2d, y2d, w1t, b1, w2t, b2)

    # Free reshape back to NCHW.
    return out2d.reshape(N, C, H, W)


def _fold_bn(w, b, gamma, beta, mean, var, eps=1e-5):
    """Fold eval-mode BatchNorm into a preceding 1x1 conv.

    w: (Cout, Cin), b: (Cout,). BN params are per Cout channel.
    Returns w_eff (Cout, Cin), b_eff (Cout, 1).
    """
    scale = gamma / jnp.sqrt(var + eps)
    w_eff = w * scale[:, None]
    b_eff = (b - mean) * scale + beta
    return w_eff, b_eff.reshape(-1, 1)


def _reference(x, y, w1t, b1, w2t, b2):
    """Pure-JAX reference of the same folded computation (NCHW in/out)."""
    N, C, H, W = x.shape
    y3 = y.reshape(N, C, H * W)
    x3 = x.reshape(N, C, H * W)
    h = jnp.maximum(jnp.einsum("ic,ncm->nim", w1t, y3) + b1[None, :, :], 0.0)
    ly = jax.nn.sigmoid(jnp.einsum("ci,nim->ncm", w2t, h) + b2[None, :, :])
    o = ly * x3 + y3
    return o.reshape(N, C, H, W)


if __name__ == "__main__":
    # Small shapes consistent with the module: channels=16, r=4 -> inter=4.
    N, C, H, W = 2, 16, 16, 16
    r = 4
    Ci = C // r

    key = jax.random.PRNGKey(0)
    kx, ky, kw1, kb1, kw2, kb2 = jax.random.split(key, 6)

    x = jax.random.normal(kx, (N, C, H, W), dtype=jnp.float32)
    y = jax.random.normal(ky, (N, C, H, W), dtype=jnp.float32)

    # Conv1x1 #1: PyTorch weight (Ci, C, 1, 1) -> channels-first matmul (Ci, C).
    conv1_w = 0.1 * jax.random.normal(kw1, (Ci, C), dtype=jnp.float32)
    conv1_b = 0.1 * jax.random.normal(kb1, (Ci,), dtype=jnp.float32)
    # Conv1x1 #2: PyTorch weight (C, Ci, 1, 1) -> channels-first matmul (C, Ci).
    conv2_w = 0.1 * jax.random.normal(kw2, (C, Ci), dtype=jnp.float32)
    conv2_b = 0.1 * jax.random.normal(kb2, (C,), dtype=jnp.float32)

    # BatchNorm params at nn.BatchNorm2d init (eval mode): gamma=1, beta=0,
    # running_mean=0, running_var=1, eps=1e-5.
    bn1 = (jnp.ones((Ci,)), jnp.zeros((Ci,)), jnp.zeros((Ci,)), jnp.ones((Ci,)))
    bn2 = (jnp.ones((C,)), jnp.zeros((C,)), jnp.zeros((C,)), jnp.ones((C,)))

    w1t, b1 = _fold_bn(conv1_w, conv1_b, *bn1)   # (Ci, C), (Ci, 1)
    w2t, b2 = _fold_bn(conv2_w, conv2_b, *bn2)   # (C, Ci), (C, 1)

    out = tlam_forward(x, y, w1t, b1, w2t, b2)
    out = jax.block_until_ready(out)

    ref = _reference(x, y, w1t, b1, w2t, b2)
    assert out.shape == (N, C, H, W)
    assert jnp.allclose(out, ref, atol=1e-5, rtol=1e-5), "mismatch vs reference"

    print("KERNEL_OK")
</pallas_src>

<mosaic_0001>
module attributes {stable_mosaic.version = 11 : i64} {
  func.func @_tlam_kernel(%arg0: i32, %arg1: i32, %arg2: memref<16x256xf32, #tpu.memory_space<vmem>>, %arg3: memref<16x256xf32, #tpu.memory_space<vmem>>, %arg4: memref<4x16xf32, #tpu.memory_space<vmem>>, %arg5: memref<4x1xf32, #tpu.memory_space<vmem>>, %arg6: memref<16x4xf32, #tpu.memory_space<vmem>>, %arg7: memref<16x1xf32, #tpu.memory_space<vmem>>, %arg8: memref<16x256xf32, #tpu.memory_space<vmem>>) attributes {dimension_semantics = [#tpu.dimension_semantics<parallel>, #tpu.dimension_semantics<parallel>], iteration_bounds = array<i64: 2, 1>, scalar_prefetch = 0 : i64, scratch_operands = 0 : i64, tpu.core_type = #tpu.core_type<tc>, window_params = [{transform_indices = @transform_0, window_bounds = array<i64: 16, 256>}, {transform_indices = @transform_1, window_bounds = array<i64: 16, 256>}, {pipeline_mode = #tpu.pipeline_mode<synchronous>, transform_indices = @transform_2, window_bounds = array<i64: 4, 16>}, {pipeline_mode = #tpu.pipeline_mode<synchronous>, transform_indices = @transform_3, window_bounds = array<i64: 4, 1>}, {pipeline_mode = #tpu.pipeline_mode<synchronous>, transform_indices = @transform_4, window_bounds = array<i64: 16, 4>}, {pipeline_mode = #tpu.pipeline_mode<synchronous>, transform_indices = @transform_5, window_bounds = array<i64: 16, 1>}, {transform_indices = @transform_6, window_bounds = array<i64: 16, 256>}]} {
    %c0 = arith.constant 0 : index
    %c0_0 = arith.constant 0 : index
    %0 = vector.load %arg2[%c0, %c0_0] : memref<16x256xf32, #tpu.memory_space<vmem>>, vector<16x256xf32>
    %c0_1 = arith.constant 0 : index
    %c0_2 = arith.constant 0 : index
    %1 = vector.load %arg3[%c0_1, %c0_2] : memref<16x256xf32, #tpu.memory_space<vmem>>, vector<16x256xf32>
    %c0_3 = arith.constant 0 : index
    %c0_4 = arith.constant 0 : index
    %2 = vector.load %arg4[%c0_3, %c0_4] : memref<4x16xf32, #tpu.memory_space<vmem>>, vector<4x16xf32>
    %cst = arith.constant dense<0.000000e+00> : vector<4x256xf32>
    %3 = tpu.matmul %2, %1, %cst {dimension_numbers = #tpu.dot_dimension_numbers<[1], [0], [0], [1], [0, 0, 1, 1], [], []>} : vector<4x16xf32>, vector<16x256xf32>, vector<4x256xf32> -> vector<4x256xf32>
    %c0_5 = arith.constant 0 : index
    %c0_6 = arith.constant 0 : index
    %4 = vector.load %arg5[%c0_5, %c0_6] : memref<4x1xf32, #tpu.memory_space<vmem>>, vector<4x1xf32>
    %5 = vector.broadcast %4 : vector<4x1xf32> to vector<4x256xf32>
    %6 = arith.addf %3, %5 : vector<4x256xf32>
    %cst_7 = arith.constant 0.000000e+00 : f32
    %7 = vector.broadcast %cst_7 : f32 to vector<4x256xf32>
    %8 = arith.maximumf %6, %7 : vector<4x256xf32>
    %c0_8 = arith.constant 0 : index
    %c0_9 = arith.constant 0 : index
    %9 = vector.load %arg6[%c0_8, %c0_9] : memref<16x4xf32, #tpu.memory_space<vmem>>, vector<16x4xf32>
    %cst_10 = arith.constant dense<0.000000e+00> : vector<16x256xf32>
    %10 = tpu.matmul %9, %8, %cst_10 {dimension_numbers = #tpu.dot_dimension_numbers<[1], [0], [0], [1], [0, 0, 1, 1], [], []>} : vector<16x4xf32>, vector<4x256xf32>, vector<16x256xf32> -> vector<16x256xf32>
    %c0_11 = arith.constant 0 : index
    %c0_12 = arith.constant 0 : index
    %11 = vector.load %arg7[%c0_11, %c0_12] : memref<16x1xf32, #tpu.memory_space<vmem>>, vector<16x1xf32>
    %12 = vector.broadcast %11 : vector<16x1xf32> to vector<16x256xf32>
    %13 = arith.addf %10, %12 : vector<16x256xf32>
    %14 = arith.negf %13 : vector<16x256xf32>
    %15 = math.exp %14 : vector<16x256xf32>
    %cst_13 = arith.constant 1.000000e+00 : f32
    %16 = vector.broadcast %cst_13 : f32 to vector<16x256xf32>
    %17 = arith.addf %16, %15 : vector<16x256xf32>
    %18 = arith.divf %16, %17 : vector<16x256xf32>
    %19 = arith.mulf %18, %0 : vector<16x256xf32>
    %20 = arith.addf %19, %1 : vector<16x256xf32>
    %c0_14 = arith.constant 0 : index
    %c0_15 = arith.constant 0 : index
    %21 = vector.load %arg8[%c0_14, %c0_15] : memref<16x256xf32, #tpu.memory_space<vmem>>, vector<16x256xf32>
    tpu.vector_store %arg8[%c0_14, %c0_15], %20 {strides = array<i32>} : memref<16x256xf32, #tpu.memory_space<vmem>>, vector<16x256xf32>,
    return
  }
  func.func @transform_0(%arg0: i32, %arg1: i32) -> (i32, i32) {
    %c0_i32 = arith.constant 0 : i32
    return %arg0, %arg1 : i32, i32
  }
  func.func @transform_1(%arg0: i32, %arg1: i32) -> (i32, i32) {
    %c0_i32 = arith.constant 0 : i32
    return %arg0, %arg1 : i32, i32
  }
  func.func @transform_2(%arg0: i32, %arg1: i32) -> (i32, i32) {
    %c0_i32 = arith.constant 0 : i32
    %c0_i32_0 = arith.constant 0 : i32
    %c0_i32_1 = arith.constant 0 : i32
    return %c0_i32, %c0_i32_0 : i32, i32
  }
  func.func @transform_3(%arg0: i32, %arg1: i32) -> (i32, i32) {
    %c0_i32 = arith.constant 0 : i32
    %c0_i32_0 = arith.constant 0 : i32
    %c0_i32_1 = arith.constant 0 : i32
    return %c0_i32, %c0_i32_0 : i32, i32
  }
  func.func @transform_4(%arg0: i32, %arg1: i32) -> (i32, i32) {
    %c0_i32 = arith.constant 0 : i32
    %c0_i32_0 = arith.constant 0 : i32
    %c0_i32_1 = arith.constant 0 : i32
    return %c0_i32, %c0_i32_0 : i32, i32
  }
  func.func @transform_5(%arg0: i32, %arg1: i32) -> (i32, i32) {
    %c0_i32 = arith.constant 0 : i32
    %c0_i32_0 = arith.constant 0 : i32
    %c0_i32_1 = arith.constant 0 : i32
    return %c0_i32, %c0_i32_0 : i32, i32
  }
  func.func @transform_6(%arg0: i32, %arg1: i32) -> (i32, i32) {
    %c0_i32 = arith.constant 0 : i32
    return %arg0, %arg1 : i32, i32
  }
}

</mosaic_0001>

<bundles_post_ra>
// kernel: tlam_forward.1
= control target key start
LH: loop header
LB: loop body
LE: loop exit
PB: predicated region body
PF: predicated region fallthrough
CT: control target
= control target key end

     0   :  { %s805_s21 = smov 0   ;;  %s807_s22 = smov 0   ;;  %s906_s0 = inlined_call_operand.vmem [shape: f32[32,256], index: 0, kind: input, shape index: {}]   ;;  %s907_s1 = inlined_call_operand.vmem [shape: f32[32,256], index: 1, kind: input, shape index: {}]   ;;  %s908_s2 = inlined_call_operand.vmem [shape: f32[4,16], index: 2, kind: input, shape index: {}]   ;;  %s909_s3 = inlined_call_operand.vmem [shape: f32[4,1], index: 3, kind: input, shape index: {}]   ;;  %s910_s4 = inlined_call_operand.vmem [shape: f32[16,4], index: 4, kind: input, shape index: {}]   ;;  %s911_s5 = inlined_call_operand.vmem [shape: f32[16,1], index: 5, kind: input, shape index: {}]   ;;  %s912_s6 = inlined_call_operand.vmem [shape: f32[32,256], index: 6, kind: output, shape index: {}]  }
   0x1   :  { %s809_s23 = smov 0  }
   0x2 LB: > { %s28_s24 = sadd.s32 1, %s763_s22  ;;  %p675_p0 = scmp.ge.s32.totalorder %s767_s23, 1  ;;  %s767_s23 = sphi %s809_s23, %s16_s23   ;;  %s763_s22 = sphi %s807_s22, %s914_s22   ;;  %s759_s21 = sphi %s805_s21, %s913_s21  }
   0x3   : > { %p30_p1 = scmp.ge.s32.totalorder %s28_s24, 2  ;;  %p254_p2 = scmp.lt.s32.totalorder %s767_s23, 3 }
   0x5   : > { %s916_s24 = smov (%p30_p1, %s28_s24), 0  ;;  %p255_p3 = pnand %p675_p0, %p254_p2 }
   0x6   : > { %s676_s25 = sshll.u32 (!%p255_p3), %s759_s21, 1 }
   0x7   : > { %258 = sbr.rel (%p255_p3) target bundleno = 328 (0x148), region = 44  ;;  %p306_p4 = scmp.lt.s32.totalorder (!%p255_p3), %s676_s25, 3 }
   0xc   : > { %v769_v0 = vmov 0   ;;  %v349_v1 = vld [vmem:[%s909_s3] sm:$0xf]  ;;  %s918_s25 = smov (!%p306_p4, %s676_s25), 3  ;;  %vm355_vm0 = vcmask 130048   ;;  %v404_v8 = vld [vmem:[%s911_s5 + $0x8] sm:$0xff] }
   0xd   : > { %727 = vset.pattern.permute.xlu0 %v769_v0  ;;  %728 = vset.pattern.permute.xlu1 %v769_v0  ;;  %s826_s28 = sshll.u32 %s918_s25, 4  ;;  %v403_v2 = vld [vmem:[%s911_s5] sm:$0xff]  ;;  %vm422_vm1 = vcmask 1043456   ;;  %vm415_vm2 = vcmask 31744   ;;  %v402_v17 = vld [vmem:[%s910_s4 + $0x8] sm:$0xff] }
   0xe   : > { %352 = vperm.xlu0 %727, %v349_v1   ;;  %s325_s7 = scalar_lea.vmem %s907_s1, %s826_s28  ;;  %v348_v7 = vld [vmem:[%s908_s2] sm:$0xf]  ;;  %412 = vperm.xlu1 %728, %v404_v8   ;;  %s868_s20 = scalar_lea.vmem %s906_s0, %s826_s28 }
   0xf   : > { %v835_v3 = vld [vmem:[%s325_s7 + $0x10] sm:$0xff]  ;;  %v837_v4 = vld [vmem:[%s325_s7 + $0x18] sm:$0xff]  ;;  %v841_v5 = vld [vmem:[%s325_s7] sm:$0xff]  ;;  %s878_s26 = scalar_lea.vmem %s912_s6, %s826_s28 }
  0x10   : > { %373 = vmatpush.msra.mxu0 %v835_v3  ;;  %393 = vmatpush.msra.mxu1 %v837_v4  ;;  %v843_v6 = vld [vmem:[%s325_s7 + $0x8] sm:$0xff]  ;;  %v401_v16 = vld [vmem:[%s910_s4] sm:$0xff] }
  0x11   : > { %v340_v54 = vld [vmem:[%s868_s20] sm:$0xff]  ;;  %v341_v57 = vld [vmem:[%s868_s20 + $0x8] sm:$0xff] }
  0x12   : > { %374 = vmatpush.msra.mxu0 %v841_v5  ;;  %394 = vmatpush.msra.mxu1 %v843_v6 }
  0x13   : > { %685 = vmatmul.msk.f32.vlgmr.msra.gmra.mxu0 %vm355_vm0, %v348_v7  ;;  %686 = vmatmul.msk.f32.vlgmr.msra.gmra.mxu1 %vm355_vm0, %v348_v7 }
  0x16   : > { %407 = vperm.xlu0 %727, %v403_v2  }
  0x80   : > { %v353_v9 = vpop.permute.xlu0 %352  ;;  %v413_v25 = vpop.permute.xlu1 %412 }
  0x88   : > { %v408_v18 = vpop.permute.xlu0 %407 }
  0x90   : > { %v376_v10 = vpop.f32.mrf.mxu0  ;;  %v396_v11 = vpop.f32.mrf.mxu1 }
  0x91   : > { %v377_v12 = vadd.f32 %v376_v10, %v353_v9  ;;  %v397_v13 = vadd.f32 %v396_v11, %v353_v9 }
  0x93   : > { %v399_v14 = vmax.f32 %v377_v12, 0.0  ;;  %v400_v15 = vmax.f32 %v397_v13, 0.0 }
  0x95   : > { %687 = vmatpush.msk.msra.mxu2 %vm422_vm1, %v399_v14  ;;  %690 = vmatpush.msk.msra.mxu3 %vm422_vm1, %v400_v15 }
  0x96   : > { %688 = vmatmul.msk.f32.vlgmr.msra.gmra.mxu2 %vm415_vm2, %v401_v16  ;;  %691 = vmatmul.msk.f32.vlgmr.msra.gmra.mxu3 %vm415_vm2, %v401_v16 }
  0x9e   : > { %689 = vmatmul.msk.f32.gmra.mxu2 %vm415_vm2, %v402_v17  ;;  %692 = vmatmul.msk.f32.gmra.mxu3 %vm415_vm2, %v402_v17  ;;  %v342_v17 = vld [vmem:[%s868_s20 + $0x10] sm:$0xff] }
 0x119   : > { %v446_v19 = vpop.f32.mrf.mxu2  ;;  %v469_v20 = vpop.f32.mrf.mxu3 }
 0x11a   : > { %v447_v21 = vadd.f32 %v446_v19, %v408_v18  ;;  %v470_v22 = vadd.f32 %v469_v20, %v408_v18 }
 0x11c   : > { %v693_v23 = vmul.f32 -1.442695, %v447_v21  ;;  %v694_v24 = vmul.f32 -1.442695, %v470_v22  ;;  %v343_v22 = vld [vmem:[%s868_s20 + $0x18] sm:$0xff] }
 0x11e   : > { %729 = vpow2.f32 %v693_v23 }
 0x11f   : > { %731 = vpow2.f32 %v694_v24 }
 0x121   : > { %v449_v26 = vpop.f32.mrf.mxu2  ;;  %v472_v27 = vpop.f32.mrf.mxu3 }
 0x122   : > { %v450_v28 = vadd.f32 %v449_v26, %v413_v25  ;;  %v473_v29 = vadd.f32 %v472_v27, %v413_v25 }
 0x124   : > { %v730_v30 = vpop.eup %729  ;;  %v695_v31 = vmul.f32 -1.442695, %v450_v28  ;;  %v696_v34 = vmul.f32 -1.442695, %v473_v29 }
 0x125   : > { %v732_v32 = vpop.eup %731  ;;  %v487_v33 = vadd.f32 1.0, %v730_v30 }
 0x126   : > { %v488_v35 = vadd.f32 1.0, %v732_v32  ;;  %733 = vpow2.f32 %v695_v31 }
 0x127   : > { %735 = vrcp.f32 %v487_v33  ;;  %v500_v45 = vand.u32 2147483647, %v487_v33  ;;  %v502_v46 = vand.u32 2147483648, %v487_v33  ;;  %vm496_vm5 = vweird.f32 %v487_v33 }
 0x128   : > { %737 = vrcp.f32 %v488_v35  ;;  %v517_v49 = vand.u32 2147483648, %v488_v35  ;;  %v515_v51 = vand.u32 2147483647, %v488_v35  ;;  %vm511_vm7 = vweird.f32 %v488_v35 }
 0x129   : > { %739 = vpow2.f32 %v696_v34  ;;  %v503_v55 = vor.u32 1.1754944e-38, %v502_v46  ;;  %vm501_vm8 = vcmp.eq.f32.partialorder %v500_v45, 8.507059e+37 }
 0x12a   : > { %v518_v59 = vor.u32 1.1754944e-38, %v517_v49  ;;  %vm516_vm10 = vcmp.eq.f32.partialorder %v515_v51, 8.507059e+37 }
 0x12c   : > { %v734_v36 = vpop.eup %733 }
 0x12d   : > { %v736_v37 = vpop.eup %735  ;;  %v859_v38 = vadd.f32 1.0, %v734_v36 }
 0x12e   : > { %v738_v39 = vpop.eup %737  ;;  %v492_v40 = vmul.f32 %v736_v37, %v487_v33  ;;  %vm497_vm3 = vweird.f32 %v736_v37 }
 0x12f   : > { %v740_v41 = vpop.eup %739  ;;  %v507_v42 = vmul.f32 %v738_v39, %v488_v35  ;;  %741 = vrcp.f32 %v859_v38  ;;  %vm512_vm4 = vweird.f32 %v738_v39  ;;  %vm498_vm6 = vmor %vm496_vm5, %vm497_vm3  ;;  %v532_v8 = vand.u32 2147483648, %v859_v38 }
 0x130   : > { %v493_v43 = vsub.f32 1.0, %v492_v40  ;;  %v862_v44 = vadd.f32 1.0, %v740_v41  ;;  %vm513_vm9 = vmor %vm511_vm7, %vm512_vm4  ;;  %v530_v12 = vand.u32 2147483647, %v859_v38  ;;  %vm526_vm12 = vweird.f32 %v859_v38 }
 0x131   : > { %v508_v47 = vsub.f32 1.0, %v507_v42  ;;  %v533_v18 = vor.u32 1.1754944e-38, %v532_v8 }
 0x132   : > { %v494_v48 = vmul.f32 %v736_v37, %v493_v43  ;;  %743 = vrcp.f32 %v862_v44  ;;  %v547_v16 = vand.u32 2147483648, %v862_v44  ;;  %vm531_vm15 = vcmp.eq.f32.partialorder %v530_v12, 8.507059e+37 }
 0x133   : > { %v509_v50 = vmul.f32 %v738_v39, %v508_v47  ;;  %vm541_vm0 = vweird.f32 %v862_v44 }
 0x134   : > { %v495_v52 = vadd.f32 %v736_v37, %v494_v48  ;;  %v548_v24 = vor.u32 1.1754944e-38, %v547_v16 }
 0x135   : > { %v742_v53 = vpop.eup %741  ;;  %v510_v56 = vadd.f32 %v738_v39, %v509_v50 }
 0x136   : > { %v499_v58 = vsel %vm498_vm6, %v736_v37, %v495_v52  ;;  %v522_v60 = vmul.f32 %v742_v53, %v859_v38  ;;  %vm527_vm11 = vweird.f32 %v742_v53 }
 0x137   : > { %v504_v61 = vsel %vm501_vm8, %v503_v55, %v499_v58  ;;  %v514_v62 = vsel %vm513_vm9, %v738_v39, %v510_v56  ;;  %vm528_vm13 = vmor %vm526_vm12, %vm527_vm11 }
 0x138   : > { %v744_v63 = vpop.eup %743  ;;  %v551_v0 = vmul.f32 %v504_v61, %v340_v54  ;;  %v519_v1 = vsel %vm516_vm10, %v518_v59, %v514_v62  ;;  %v523_v2 = vsub.f32 1.0, %v522_v60 }
 0x139   : > { %v552_v7 = vmul.f32 %v519_v1, %v341_v57  ;;  %v537_v9 = vmul.f32 %v744_v63, %v862_v44  ;;  %vm542_vm14 = vweird.f32 %v744_v63 }
 0x13a   : > { %v555_v10 = vadd.f32 %v551_v0, %v841_v5  ;;  %v524_v11 = vmul.f32 %v742_v53, %v523_v2  ;;  %v545_v5 = vand.u32 2147483647, %v862_v44  ;;  %vm543_vm1 = vmor %vm541_vm0, %vm542_vm14 }
 0x13b   : > { %v556_v13 = vadd.f32 %v552_v7, %v843_v6  ;;  %v538_v14 = vsub.f32 1.0, %v537_v9 }
 0x13c   : > { %559 = vst [vmem:[%s878_s26] sm:$0xff] %v555_v10  ;;  %v525_v15 = vadd.f32 %v742_v53, %v524_v11  ;;  %vm546_vm2 = vcmp.eq.f32.partialorder %v545_v5, 8.507059e+37 }
 0x13d   : > { %560 = vst [vmem:[%s878_s26 + $0x8] sm:$0xff] %v556_v13  ;;  %v539_v19 = vmul.f32 %v744_v63, %v538_v14 }
 0x13e   : > { %v529_v20 = vsel %vm528_vm13, %v742_v53, %v525_v15 }
 0x13f   : > { %v534_v6 = vsel %vm531_vm15, %v533_v18, %v529_v20  ;;  %v540_v21 = vadd.f32 %v744_v63, %v539_v19 }
 0x140   : > { %v553_v23 = vmul.f32 %v534_v6, %v342_v17 }
 0x141   : > { %v544_v25 = vsel %vm543_vm1, %v744_v63, %v540_v21 }
 0x142   : > { %v557_v26 = vadd.f32 %v553_v23, %v835_v3  ;;  %v549_v27 = vsel %vm546_vm2, %v548_v24, %v544_v25 }
 0x143   : > { %v554_v28 = vmul.f32 %v549_v27, %v343_v22 }
 0x144   : > { %561 = vst [vmem:[%s878_s26 + $0x10] sm:$0xff] %v557_v26 }
 0x145   : > { %v558_v29 = vadd.f32 %v554_v28, %v837_v4 }
 0x147   : > { %562 = vst [vmem:[%s878_s26 + $0x18] sm:$0xff] %v558_v29 }
 0x148 PF: > { %s16_s23 = sadd.s32 1, %s767_s23   ;;  %s913_s21 = smov %s763_s22 }
 0x149   : > { %p13_p5 = scmp.ge.s32.totalorder %s16_s23, 4   ;;  %s914_s22 = smov %s916_s24 }
 0x14b   :  { %15 = sbr.rel (!%p13_p5) target bundleno = 2 (0x2), region = 77 }

</bundles_post_ra>
